<compile_context>
chip_gen: v5e
topology: v5e:2x2
jax: 0.10.0
libtpu: 0.0.40
codegen_flags: <defaults>
</compile_context>

<pallas_src>
import jax
import jax.numpy as jnp
from jax.experimental import pallas as pl
from jax.experimental.pallas import tpu as pltpu


def decoder_kernel(x_ref, w1_ref, b1_ref, w2_ref, b2_ref, o_ref):
    # Hidden layer: (TB, D) @ (D, H) on the MXU, bf16 operands / f32 accumulate.
    h = jnp.dot(x_ref[...], w1_ref[...], preferred_element_type=jnp.float32)
    # Bias + ReLU in f32 on the VPU.
    h = jnp.maximum(h + b1_ref[...], 0.0)
    # Dropout(0.3) -> identity at inference time.
    # Output layer: (TB, H) @ (H, Cp), bf16 operands / f32 accumulate, lane-dense N.
    out = jnp.dot(h.astype(jnp.bfloat16), w2_ref[...],
                  preferred_element_type=jnp.float32)
    o_ref[...] = (out + b2_ref[...]).astype(o_ref.dtype)


def _round_up(n, m):
    return ((n + m - 1) // m) * m


# Above this batch size we tile; below it a single grid step (one DMA'd x tile,
# resident weights, one output store) is cheapest.
_MAX_SINGLE_TILE = 2048


def _forward_impl(x, w1_bf, b1, w2_bf, b2, num_classes):
    B, D = x.shape
    H = w1_bf.shape[1]
    Cp = w2_bf.shape[1]

    # --- batch tiling (all static at trace time) ---
    if B <= _MAX_SINGLE_TILE:
        nb = 1
        TB = _round_up(B, 16)            # bf16 sublane packing: 16 rows / vreg
    else:
        nb = 2 * pl.cdiv(B, 2 * _MAX_SINGLE_TILE)   # even step count -> both v7x TCs busy
        TB = _round_up(pl.cdiv(B, nb), 256)         # M a multiple of 256 for v6e/v7x MXU
    Bp = nb * TB

    # x prep fuses with the surrounding jit (pad + bf16 cast, no extra launches).
    x_bf = jnp.pad(x, ((0, Bp - B), (0, 0))).astype(jnp.bfloat16)

    flops = 2 * Bp * (D * H + H * Cp)
    bytes_accessed = (Bp * D * 2          # x (bf16)
                      + D * H * 2         # w1 (bf16)
                      + H * 4             # b1 (f32)
                      + H * Cp * 2        # w2 (bf16)
                      + Cp * 4            # b2 (f32)
                      + Bp * Cp * 4)      # output (f32)

    out_padded = pl.pallas_call(
        decoder_kernel,
        out_shape=jax.ShapeDtypeStruct((Bp, Cp), jnp.float32),
        grid=(nb,),
        in_specs=[
            pl.BlockSpec((TB, D), lambda i: (i, 0)),   # x tile, pipelined over batch
            pl.BlockSpec((D, H), lambda i: (0, 0)),    # w1 resident in VMEM
            pl.BlockSpec((1, H), lambda i: (0, 0)),    # b1 resident
            pl.BlockSpec((H, Cp), lambda i: (0, 0)),   # w2 resident
            pl.BlockSpec((1, Cp), lambda i: (0, 0)),   # b2 resident
            # (Total resident VMEM ~few hundred KiB; pl.Buffered(1) single-buffering
            #  of the weights is an optional micro-saving, not needed at these sizes.)
        ],
        out_specs=pl.BlockSpec((TB, Cp), lambda i: (i, 0)),
        compiler_params=pltpu.CompilerParams(
            dimension_semantics=("parallel",),
        ),
        cost_estimate=pl.CostEstimate(
            flops=flops, transcendentals=0, bytes_accessed=bytes_accessed),
    )(x_bf, w1_bf, b1, w2_bf, b2)

    # Slice lives inside the same jit as the kernel -> fused, no extra dispatch.
    return out_padded[:B, :num_classes]


def make_decoder(w1_t, b1, w2_t, b2):
    """One-time init. w1_t: (D, H); b1: (1, H); w2_t: (H, C); b2: (1, C).

    Weights are the transposed PyTorch Linear weights (in, out) so the kernel
    does plain `x @ W`. Returns a jitted forward: x (B, D) f32 -> (B, C) f32.
    """
    D, H = w1_t.shape
    C = w2_t.shape[1]
    Cp = max(128, _round_up(C, 128))

    params = dict(
        w1_bf=w1_t.astype(jnp.bfloat16),
        b1=b1.reshape(1, H).astype(jnp.float32),
        w2_bf=jnp.pad(w2_t, ((0, 0), (0, Cp - C))).astype(jnp.bfloat16),
        b2=jnp.pad(b2.reshape(1, C), ((0, 0), (0, Cp - C))).astype(jnp.float32),
    )

    @jax.jit
    def forward(x, p):
        return _forward_impl(x, p["w1_bf"], p["b1"], p["w2_bf"], p["b2"], C)

    return lambda x: forward(x, params)


def reference(x, w1_t, b1, w2_t, b2):
    # Emulate the kernel's bf16-in / f32-accumulate numerics.
    xb = x.astype(jnp.bfloat16).astype(jnp.float32)
    w1b = w1_t.astype(jnp.bfloat16).astype(jnp.float32)
    h = jnp.maximum(xb @ w1b + b1, 0.0)
    hb = h.astype(jnp.bfloat16).astype(jnp.float32)
    w2b = w2_t.astype(jnp.bfloat16).astype(jnp.float32)
    return hb @ w2b + b2


if __name__ == "__main__":
    # Shapes consistent with the module: batch=8, input_dim=32,
    # hidden=512 (fixed by the architecture), num_classes=8.
    B, D, H, C = 8, 32, 512, 8

    key = jax.random.PRNGKey(0)
    kx, k1, k2, k3, k4 = jax.random.split(key, 5)

    x = jax.random.normal(kx, (B, D), dtype=jnp.float32)

    # Deterministic parameter init (uniform, roughly matching nn.Linear scale).
    bound1 = 1.0 / (D ** 0.5)
    bound2 = 1.0 / (H ** 0.5)
    w1_t = jax.random.uniform(k1, (D, H), minval=-bound1, maxval=bound1, dtype=jnp.float32)
    b1 = jax.random.uniform(k2, (1, H), minval=-bound1, maxval=bound1, dtype=jnp.float32)
    w2_t = jax.random.uniform(k3, (H, C), minval=-bound2, maxval=bound2, dtype=jnp.float32)
    b2 = jax.random.uniform(k4, (1, C), minval=-bound2, maxval=bound2, dtype=jnp.float32)

    # One-time weight prep (pad + bf16 cast), then a jitted forward.
    decoder = make_decoder(w1_t, b1, w2_t, b2)

    # Small-batch path (single grid step, TB = 16).
    out = decoder(x)
    jax.block_until_ready(out)
    ref = reference(x, w1_t, b1, w2_t, b2)
    assert out.shape == (B, C)
    assert jnp.allclose(out, ref, atol=1e-3, rtol=1e-3), float(jnp.abs(out - ref).max())

    # Larger, non-multiple batch: still a single grid step (TB = 272, no 128-padding waste).
    B2 = 260
    x2 = jax.random.normal(jax.random.PRNGKey(1), (B2, D), dtype=jnp.float32)
    out2 = decoder(x2)
    jax.block_until_ready(out2)
    ref2 = reference(x2, w1_t, b1, w2_t, b2)
    assert out2.shape == (B2, C)
    assert jnp.allclose(out2, ref2, atol=1e-3, rtol=1e-3), float(jnp.abs(out2 - ref2).max())

    # Large batch: exercises the tiled path (even step count, TB multiple of 256).
    B3 = 4100
    x3 = jax.random.normal(jax.random.PRNGKey(2), (B3, D), dtype=jnp.float32)
    out3 = decoder(x3)
    jax.block_until_ready(out3)
    ref3 = reference(x3, w1_t, b1, w2_t, b2)
    assert out3.shape == (B3, C)
    assert jnp.allclose(out3, ref3, atol=1e-3, rtol=1e-3), float(jnp.abs(out3 - ref3).max())

    print("KERNEL_OK")
</pallas_src>

<mosaic_0001>
module attributes {stable_mosaic.version = 11 : i64} {
  func.func @decoder_kernel(%arg0: i32, %arg1: memref<16x32xbf16, #tpu.memory_space<vmem>>, %arg2: memref<32x512xbf16, #tpu.memory_space<vmem>>, %arg3: memref<1x512xf32, #tpu.memory_space<vmem>>, %arg4: memref<512x128xbf16, #tpu.memory_space<vmem>>, %arg5: memref<1x128xf32, #tpu.memory_space<vmem>>, %arg6: memref<16x128xf32, #tpu.memory_space<vmem>>) attributes {dimension_semantics = [#tpu.dimension_semantics<parallel>], iteration_bounds = array<i64: 1>, scalar_prefetch = 0 : i64, scratch_operands = 0 : i64, tpu.core_type = #tpu.core_type<tc>, window_params = [{transform_indices = @transform_0, window_bounds = array<i64: 16, 32>}, {pipeline_mode = #tpu.pipeline_mode<synchronous>, transform_indices = @transform_1, window_bounds = array<i64: 32, 512>}, {pipeline_mode = #tpu.pipeline_mode<synchronous>, transform_indices = @transform_2, window_bounds = array<i64: 1, 512>}, {pipeline_mode = #tpu.pipeline_mode<synchronous>, transform_indices = @transform_3, window_bounds = array<i64: 512, 128>}, {pipeline_mode = #tpu.pipeline_mode<synchronous>, transform_indices = @transform_4, window_bounds = array<i64: 1, 128>}, {transform_indices = @transform_5, window_bounds = array<i64: 16, 128>}]} {
    %c0 = arith.constant 0 : index
    %c0_0 = arith.constant 0 : index
    %0 = vector.load %arg1[%c0, %c0_0] : memref<16x32xbf16, #tpu.memory_space<vmem>>, vector<16x32xbf16>
    %c0_1 = arith.constant 0 : index
    %c0_2 = arith.constant 0 : index
    %1 = vector.load %arg2[%c0_1, %c0_2] : memref<32x512xbf16, #tpu.memory_space<vmem>>, vector<32x512xbf16>
    %cst = arith.constant dense<0.000000e+00> : vector<16x512xf32>
    %2 = tpu.matmul %0, %1, %cst {dimension_numbers = #tpu.dot_dimension_numbers<[1], [0], [0], [1], [0, 0, 1, 1], [], []>} : vector<16x32xbf16>, vector<32x512xbf16>, vector<16x512xf32> -> vector<16x512xf32>
    %c0_3 = arith.constant 0 : index
    %c0_4 = arith.constant 0 : index
    %3 = vector.load %arg3[%c0_3, %c0_4] : memref<1x512xf32, #tpu.memory_space<vmem>>, vector<1x512xf32>
    %4 = vector.broadcast %3 : vector<1x512xf32> to vector<16x512xf32>
    %5 = arith.addf %2, %4 : vector<16x512xf32>
    %cst_5 = arith.constant 0.000000e+00 : f32
    %6 = vector.broadcast %cst_5 : f32 to vector<16x512xf32>
    %7 = arith.maximumf %5, %6 : vector<16x512xf32>
    %8 = arith.truncf %7 : vector<16x512xf32> to vector<16x512xbf16>
    %c0_6 = arith.constant 0 : index
    %c0_7 = arith.constant 0 : index
    %9 = vector.load %arg4[%c0_6, %c0_7] : memref<512x128xbf16, #tpu.memory_space<vmem>>, vector<512x128xbf16>
    %cst_8 = arith.constant dense<0.000000e+00> : vector<16x128xf32>
    %10 = tpu.matmul %8, %9, %cst_8 {dimension_numbers = #tpu.dot_dimension_numbers<[1], [0], [0], [1], [0, 0, 1, 1], [], []>} : vector<16x512xbf16>, vector<512x128xbf16>, vector<16x128xf32> -> vector<16x128xf32>
    %c0_9 = arith.constant 0 : index
    %c0_10 = arith.constant 0 : index
    %11 = vector.load %arg5[%c0_9, %c0_10] : memref<1x128xf32, #tpu.memory_space<vmem>>, vector<1x128xf32>
    %12 = vector.broadcast %11 : vector<1x128xf32> to vector<16x128xf32>
    %13 = arith.addf %10, %12 : vector<16x128xf32>
    %c0_11 = arith.constant 0 : index
    %c0_12 = arith.constant 0 : index
    %14 = vector.load %arg6[%c0_11, %c0_12] : memref<16x128xf32, #tpu.memory_space<vmem>>, vector<16x128xf32>
    tpu.vector_store %arg6[%c0_11, %c0_12], %13 {strides = array<i32>} : memref<16x128xf32, #tpu.memory_space<vmem>>, vector<16x128xf32>,
    return
  }
  func.func @transform_0(%arg0: i32) -> (i32, i32) {
    %c0_i32 = arith.constant 0 : i32
    %c0_i32_0 = arith.constant 0 : i32
    return %arg0, %c0_i32 : i32, i32
  }
  func.func @transform_1(%arg0: i32) -> (i32, i32) {
    %c0_i32 = arith.constant 0 : i32
    %c0_i32_0 = arith.constant 0 : i32
    %c0_i32_1 = arith.constant 0 : i32
    return %c0_i32, %c0_i32_0 : i32, i32
  }
  func.func @transform_2(%arg0: i32) -> (i32, i32) {
    %c0_i32 = arith.constant 0 : i32
    %c0_i32_0 = arith.constant 0 : i32
    %c0_i32_1 = arith.constant 0 : i32
    return %c0_i32, %c0_i32_0 : i32, i32
  }
  func.func @transform_3(%arg0: i32) -> (i32, i32) {
    %c0_i32 = arith.constant 0 : i32
    %c0_i32_0 = arith.constant 0 : i32
    %c0_i32_1 = arith.constant 0 : i32
    return %c0_i32, %c0_i32_0 : i32, i32
  }
  func.func @transform_4(%arg0: i32) -> (i32, i32) {
    %c0_i32 = arith.constant 0 : i32
    %c0_i32_0 = arith.constant 0 : i32
    %c0_i32_1 = arith.constant 0 : i32
    return %c0_i32, %c0_i32_0 : i32, i32
  }
  func.func @transform_5(%arg0: i32) -> (i32, i32) {
    %c0_i32 = arith.constant 0 : i32
    %c0_i32_0 = arith.constant 0 : i32
    return %arg0, %c0_i32 : i32, i32
  }
}

</mosaic_0001>

<bundles_post_ra>
// kernel: forward.1
= control target key start
LH: loop header
LB: loop body
LE: loop exit
PB: predicated region body
PF: predicated region fallthrough
CT: control target
= control target key end

     0   :  { %10 = vsyncpa [#allocation3], 0  ;;  %s839_s0 = inlined_call_operand.vmem [shape: bf16[16,32], index: 0, kind: input, shape index: {}]   ;;  %s840_s1 = inlined_call_operand.hbm [shape: bf16[32,512], index: 1, kind: input, shape index: {}]   ;;  %s841_s2 = inlined_call_operand.vmem [shape: f32[1,512], index: 2, kind: input, shape index: {}]   ;;  %s842_s3 = inlined_call_operand.hbm [shape: bf16[512,128], index: 3, kind: input, shape index: {}]   ;;  %s843_s4 = inlined_call_operand.vmem [shape: f32[1,128], index: 4, kind: input, shape index: {}]   ;;  %s844_s5 = inlined_call_operand.vmem [shape: f32[16,128], index: 5, kind: output, shape index: {}]  }
   0x1   :  { %s18_s20 = sshll.u32 %s840_s1, 4  ;;  %s19_s20 = int_to_ptr.hbm [resolvable:$true] %s18_s20 }
   0x2   :  { %11 = vsyncpa [#allocation5], 0  ;;  %s782_s21 = smov [#allocation2]   ;;  %s33_s25 = sshll.u32 %s842_s3, 4  ;;  %s34_s25 = int_to_ptr.hbm [resolvable:$true] %s33_s25 }
   0x3   :  { %s20_s22 = sshll.u32 %s782_s21, 4  ;;  %s783_s26 = smov 256   ;;  %s21_s22 = int_to_ptr.vmem [resolvable:$true] %s20_s22 }
   0x4   :  { %s784_s27 = smov 16   ;;  %s785_s28 = smov [#allocation4]  }
   0x5   :  { %26 = dma.hbm_to_vmem [thread:$0]  %s19_s20, 1024, %s21_s22, [#allocation3], %s783_s26, %s783_s26, %s784_s27  }
   0x6   :  { %s35_s29 = sshll.u32 %s785_s28, 4  ;;  %s786_s30 = smov 64   ;;  %s36_s29 = int_to_ptr.vmem [resolvable:$true] %s35_s29 }
   0x7   :  { %s787_s6 = smov 4  }
   0x8   :  { %41 = dma.hbm_to_vmem [thread:$0]  %s34_s25, 4096, %s36_s29, [#allocation5], %s786_s30, %s786_s30, %s787_s6  }
   0x9   :  { %778 = dma.done.wait [#allocation3], 1024  }
   0xa   :  { %779 = vsyncadd [#allocation3], 4294966272 }
   0xb   :  { %780 = dma.done.wait [#allocation5], 4096  }
   0xc   :  { %781 = vsyncadd [#allocation5], 4294963200  ;;  %v536_v0 = vld [vmem:[#allocation2 + $0x20] sm:$0xf]  ;;  %v689_v1 = vld [vmem:[#allocation2 + $0x2c] sm:$0xf0] }
   0xd   :  { %v687_v2 = vld [vmem:[#allocation2 + $0x24] sm:$0xf]  ;;  %v537_v3 = vor.u32 %v689_v1, %v536_v0  ;;  %v538_v4 = vld [vmem:[#allocation2 + $0x30] sm:$0xf0]  ;;  %v544_v5 = vld [vmem:[#allocation2 + $0x28] sm:$0xf] }
   0xe   :  { %v690_v6 = vld [vmem:[#allocation2 + $0x34] sm:$0xf0]  ;;  %v541_v7 = vor.u32 %v687_v2, %v538_v4  ;;  %v688_v9 = vld [vmem:[#allocation2 + $0x2c] sm:$0xf]  ;;  %v546_v10 = vld [vmem:[#allocation2 + $0x38] sm:$0xf0] }
   0xf   :  { %v545_v8 = vor.u32 %v690_v6, %v544_v5  ;;  %v520_v11 = vld [vmem:[#allocation2] sm:$0xf]  ;;  %128 = vmatpush.bf16.msra.mxu0 %v537_v3  ;;  %v549_v12 = vor.u32 %v688_v9, %v546_v10  ;;  %v685_v13 = vld [vmem:[#allocation2 + $0xc] sm:$0xf0]  ;;  %v683_v14 = vld [vmem:[#allocation2 + $0x4] sm:$0xf] }
  0x10   :  { %v522_v15 = vld [vmem:[#allocation2 + $0x10] sm:$0xf0]  ;;  %142 = vmatpush.bf16.msra.mxu1 %v541_v7  ;;  %v521_v16 = vor.u32 %v685_v13, %v520_v11  ;;  %v528_v18 = vld [vmem:[#allocation2 + $0x8] sm:$0xf]  ;;  %v686_v19 = vld [vmem:[#allocation2 + $0x14] sm:$0xf0] }
  0x11   :  { %156 = vmatpush.bf16.msra.mxu2 %v545_v8  ;;  %v525_v17 = vor.u32 %v683_v14, %v522_v15  ;;  %v684_v20 = vld [vmem:[#allocation2 + $0xc] sm:$0xf]  ;;  %170 = vmatpush.bf16.msra.mxu3 %v549_v12  ;;  %v529_v21 = vor.u32 %v686_v19, %v528_v18  ;;  %v530_v22 = vld [vmem:[#allocation2 + $0x18] sm:$0xf0]  ;;  %v682_v25 = vld [vmem:[%s839_s0] sm:$0xff]  ;;  %vm118_vm0 = vcmask 261120  }
  0x12   :  { %v698_v23 = vld [vmem:[#allocation4 + $0x38] sm:$0xff]  ;;  %v533_v24 = vor.u32 %v684_v20, %v530_v22  ;;  %v697_v28 = vld [vmem:[#allocation4 + $0x30] sm:$0xff]  ;;  %v696_v32 = vld [vmem:[#allocation4 + $0x28] sm:$0xff] }
  0x13   :  { %v706_v26 = vld [vmem:[#allocation4 + $0x78] sm:$0xff]  ;;  %129 = vmatpush.bf16.msra.mxu0 %v521_v16  ;;  %v705_v30 = vld [vmem:[#allocation4 + $0x70] sm:$0xff]  ;;  %v704_v34 = vld [vmem:[#allocation4 + $0x68] sm:$0xff] }
  0x14   :  { %143 = vmatpush.bf16.msra.mxu1 %v525_v17  ;;  %v714_v27 = vld [vmem:[#allocation4 + $0xb8] sm:$0xff]  ;;  %v713_v31 = vld [vmem:[#allocation4 + $0xb0] sm:$0xff]  ;;  %v712_v35 = vld [vmem:[#allocation4 + $0xa8] sm:$0xff] }
  0x15   :  { %157 = vmatpush.bf16.msra.mxu2 %v529_v21  ;;  %171 = vmatpush.bf16.msra.mxu3 %v533_v24  ;;  %v722_v29 = vld [vmem:[#allocation4 + $0xf8] sm:$0xff]  ;;  %v721_v33 = vld [vmem:[#allocation4 + $0xf0] sm:$0xff]  ;;  %v695_v36 = vld [vmem:[#allocation4 + $0x20] sm:$0xff] }
  0x16   :  { %550 = vmatmul.msk.bf16.vlgmr.msra.gmra.mxu0 %vm118_vm0, %v682_v25  ;;  %v720_v37 = vld [vmem:[#allocation4 + $0xe8] sm:$0xff]  ;;  %v703_v38 = vld [vmem:[#allocation4 + $0x60] sm:$0xff]  ;;  %v694_v39 = vld [vmem:[#allocation4 + $0x18] sm:$0xff] }
  0x17   :  { %450 = vmatpush.bf16.msrb.mxu0 %v698_v23  ;;  %551 = vmatmul.msk.bf16.vlgmr.msra.gmra.mxu1 %vm118_vm0, %v682_v25  ;;  %v702_v40 = vld [vmem:[#allocation4 + $0x58] sm:$0xff]  ;;  %v711_v41 = vld [vmem:[#allocation4 + $0xa0] sm:$0xff]  ;;  %v693_v43 = vld [vmem:[#allocation4 + $0x10] sm:$0xff] }
  0x18   :  { %464 = vmatpush.bf16.msrb.mxu1 %v706_v26  ;;  %552 = vmatmul.msk.bf16.vlgmr.msra.gmra.mxu2 %vm118_vm0, %v682_v25  ;;  %v719_v42 = vld [vmem:[#allocation4 + $0xe0] sm:$0xff]  ;;  %v701_v44 = vld [vmem:[#allocation4 + $0x50] sm:$0xff]  ;;  %v710_v45 = vld [vmem:[#allocation4 + $0x98] sm:$0xff] }
  0x19   :  { %553 = vmatmul.msk.bf16.vlgmr.msra.gmra.mxu3 %vm118_vm0, %v682_v25  ;;  %478 = vmatpush.bf16.msrb.mxu2 %v714_v27  ;;  %v718_v46 = vld [vmem:[#allocation4 + $0xd8] sm:$0xff]  ;;  %v692_v47 = vld [vmem:[#allocation4 + $0x8] sm:$0xff]  ;;  %v709_v49 = vld [vmem:[#allocation4 + $0x90] sm:$0xff] }
  0x1a   :  { %492 = vmatpush.bf16.msrb.mxu3 %v722_v29  ;;  %v700_v48 = vld [vmem:[#allocation4 + $0x48] sm:$0xff]  ;;  %v717_v50 = vld [vmem:[#allocation4 + $0xd0] sm:$0xff]  ;;  %v691_v51 = vld [vmem:[#allocation4] sm:$0xff] }
  0x1b   :  { %451 = vmatpush.bf16.msrb.mxu0 %v697_v28  ;;  %v699_v52 = vld [vmem:[#allocation4 + $0x40] sm:$0xff]  ;;  %v708_v53 = vld [vmem:[#allocation4 + $0x88] sm:$0xff] }
  0x1c   :  { %465 = vmatpush.bf16.msrb.mxu1 %v705_v30  ;;  %v716_v54 = vld [vmem:[#allocation4 + $0xc8] sm:$0xff]  ;;  %v707_v55 = vld [vmem:[#allocation4 + $0x80] sm:$0xff] }
  0x1d   :  { %479 = vmatpush.bf16.msrb.mxu2 %v713_v31  ;;  %v715_v56 = vld [vmem:[#allocation4 + $0xc0] sm:$0xff] }
  0x1e   :  { %493 = vmatpush.bf16.msrb.mxu3 %v721_v33  ;;  %v63_v57 = vld [vmem:[%s841_s2] sm:$0xf] }
  0x1f   :  { %452 = vmatpush.bf16.msrb.mxu0 %v696_v32  ;;  %v65_v59 = vperm.slane %v63_v57, 0  ;;  %v66_v61 = vperm.slane %v63_v57, 1  ;;  %v67_v7 = vperm.slane %v63_v57, 2  ;;  %v68_v9 = vperm.slane %v63_v57, 3  ;;  %v729_v27 = vld [vmem:[%s843_s4] ss:$0 sm:$0xff] }
  0x20   :  { %466 = vmatpush.bf16.msrb.mxu1 %v704_v34 }
  0x21   :  { %480 = vmatpush.bf16.msrb.mxu2 %v712_v35 }
  0x22   :  { %494 = vmatpush.bf16.msrb.mxu3 %v720_v37 }
  0x23   :  { %453 = vmatpush.bf16.msrb.mxu0 %v695_v36 }
  0x24   :  { %467 = vmatpush.bf16.msrb.mxu1 %v703_v38 }
  0x25   :  { %481 = vmatpush.bf16.msrb.mxu2 %v711_v41 }
  0x26   :  { %495 = vmatpush.bf16.msrb.mxu3 %v719_v42 }
  0x27   :  { %454 = vmatpush.bf16.msrb.mxu0 %v694_v39 }
  0x28   :  { %468 = vmatpush.bf16.msrb.mxu1 %v702_v40 }
  0x29   :  { %482 = vmatpush.bf16.msrb.mxu2 %v710_v45 }
  0x2a   :  { %496 = vmatpush.bf16.msrb.mxu3 %v718_v46 }
  0x2b   :  { %455 = vmatpush.bf16.msrb.mxu0 %v693_v43 }
  0x2c   :  { %469 = vmatpush.bf16.msrb.mxu1 %v701_v44 }
  0x2d   :  { %483 = vmatpush.bf16.msrb.mxu2 %v709_v49 }
  0x2e   :  { %497 = vmatpush.bf16.msrb.mxu3 %v717_v50 }
  0x2f   :  { %456 = vmatpush.bf16.msrb.mxu0 %v692_v47 }
  0x30   :  { %470 = vmatpush.bf16.msrb.mxu1 %v700_v48 }
  0x31   :  { %484 = vmatpush.bf16.msrb.mxu2 %v708_v53 }
  0x32   :  { %498 = vmatpush.bf16.msrb.mxu3 %v716_v54 }
  0x33   :  { %457 = vmatpush.bf16.msrb.mxu0 %v691_v51 }
  0x34   :  { %471 = vmatpush.bf16.msrb.mxu1 %v699_v52 }
  0x35   :  { %485 = vmatpush.bf16.msrb.mxu2 %v707_v55 }
  0x36   :  { %499 = vmatpush.bf16.msrb.mxu3 %v715_v56 }
  0x93   :  { %v131_v58 = vpop.f32.mrf.mxu0 }
  0x94   :  { %v145_v60 = vpop.f32.mrf.mxu1  ;;  %v132_v62 = vadd.f32 %v131_v58, %v65_v59 }
  0x95   :  { %v146_v63 = vadd.f32 %v145_v60, %v66_v61 }
  0x96   :  { %v178_v3 = vmax.f32 %v132_v62, 0.0 }
  0x97   :  { %v179_v6 = vmax.f32 %v146_v63, 0.0 }
  0x9b   :  { %v159_v0 = vpop.f32.mrf.mxu2  ;;  %v133_v2 = vpop.f32.mrf.mxu0 }
  0x9c   :  { %v173_v1 = vpop.f32.mrf.mxu3  ;;  %v134_v4 = vadd.f32 %v133_v2, %v65_v59  ;;  %v147_v5 = vpop.f32.mrf.mxu1  ;;  %v160_v13 = vadd.f32 %v159_v0, %v67_v7 }
  0x9d   :  { %v148_v8 = vadd.f32 %v147_v5, %v66_v61  ;;  %v174_v15 = vadd.f32 %v173_v1, %v68_v9 }
  0x9e   :  { %v182_v10 = vmax.f32 %v134_v4, 0.0  ;;  %v180_v20 = vmax.f32 %v160_v13, 0.0 }
  0x9f   :  { %v183_v11 = vmax.f32 %v148_v8, 0.0  ;;  %v181_v22 = vmax.f32 %v174_v15, 0.0 }
  0xa0   :  { %v186_v12 = vpack.c.bf16 %v182_v10, %v178_v3 }
  0xa1   :  { %v187_v14 = vpack.c.bf16 %v183_v11, %v179_v6 }
  0xa2   :  { %458 = vmatmul.bf16.vlgmr.msrb.gmra.mxu0 %v186_v12 }
  0xa3   :  { %v161_v16 = vpop.f32.mrf.mxu2  ;;  %472 = vmatmul.bf16.vlgmr.msrb.gmra.mxu1 %v187_v14 }
  0xa4   :  { %v162_v17 = vadd.f32 %v161_v16, %v67_v7  ;;  %v175_v18 = vpop.f32.mrf.mxu3 }
  0xa5   :  { %v176_v19 = vadd.f32 %v175_v18, %v68_v9 }
  0xa6   :  { %v184_v21 = vmax.f32 %v162_v17, 0.0 }
  0xa7   :  { %v185_v23 = vmax.f32 %v176_v19, 0.0 }
  0xa8   :  { %v188_v24 = vpack.c.bf16 %v184_v21, %v180_v20 }
  0xa9   :  { %v189_v25 = vpack.c.bf16 %v185_v23, %v181_v22 }
  0xaa   :  { %486 = vmatmul.bf16.vlgmr.msrb.gmra.mxu2 %v188_v24 }
  0xab   :  { %500 = vmatmul.bf16.vlgmr.msrb.gmra.mxu3 %v189_v25 }
 0x11f   :  { %v459_v26 = vpop.f32.mrf.mxu0 }
 0x120   :  { %v460_v28 = vadd.f32 %v729_v27, %v459_v26  ;;  %v473_v29 = vpop.f32.mrf.mxu1 }
 0x122   :  { %v474_v30 = vadd.f32 %v473_v29, %v460_v28 }
 0x127   :  { %v461_v31 = vpop.f32.mrf.mxu0 }
 0x128   :  { %v462_v35 = vadd.f32 %v729_v27, %v461_v31  ;;  %v475_v37 = vpop.f32.mrf.mxu1 }
 0x12a   :  { %v476_v38 = vadd.f32 %v475_v37, %v462_v35 }
 0x12d   :  { %v487_v32 = vpop.f32.mrf.mxu2 }
 0x12e   :  { %v488_v33 = vadd.f32 %v487_v32, %v474_v30  ;;  %v501_v34 = vpop.f32.mrf.mxu3 }
 0x130   :  { %v502_v36 = vadd.f32 %v501_v34, %v488_v33 }
 0x132   :  { %506 = vst [vmem:[%s844_s5] sm:$0xff] %v502_v36 }
 0x135   :  { %v489_v39 = vpop.f32.mrf.mxu2 }
 0x136   :  { %v490_v40 = vadd.f32 %v489_v39, %v476_v38  ;;  %v503_v41 = vpop.f32.mrf.mxu3 }
 0x138   :  { %v504_v42 = vadd.f32 %v503_v41, %v490_v40 }
 0x13a   :  { %507 = vst [vmem:[%s844_s5 + $0x8] sm:$0xff] %v504_v42 }
 0x13b   :  { %512 = vsyncpa [#allocation3], 1 }
 0x13c   :  { %513 = vsyncpa [#allocation5], 1 }

</bundles_post_ra>
